<compile_context>
chip_gen: v7x
topology: tpu7x:2x2x1
jax: 0.10.0
libtpu: 0.0.40
codegen_flags: <defaults>
</compile_context>

<pallas_src>
import functools
import math

import jax
import jax.numpy as jnp
from jax.experimental import pallas as pl
from jax.experimental.pallas import tpu as pltpu


def _round_up(a, b):
    return ((a + b - 1) // b) * b


def _sagnn_kernel(*refs, nmid, compute_dtype):
    """Fused forward for one node tile.

    refs = (x_ref, w0f_ref, [wmid_ref,] wlast_ref, o_ref)
      x_ref:    (TN, nfeat*nagp)          f32 lane-dense input tile
      w0f_ref:  (nfeat*nagp, nhidden)     AGP weights (+ first residual) folded in
      wmid_ref: (nmid, nhidden, nhidden)  residual identity folded in (only if nmid > 0)
      wlast_ref:(nhidden, nclass)         residual identity folded in (if square)
      o_ref:    (TN, nclass)

    Invariant: rows of the (ragged) last node tile beyond N hold garbage; that
    is safe because there is no cross-row reduction and Pallas masks the
    out-of-bounds output rows on store.
    """
    if nmid > 0:
        x_ref, w0f_ref, wmid_ref, wlast_ref, o_ref = refs
    else:
        x_ref, w0f_ref, wlast_ref, o_ref = refs
        wmid_ref = None

    # In-kernel cast (f32 tile -> compute dtype) right before the first dot:
    # avoids a standalone HBM astype pass over x in the wrapper.
    x = x_ref[...].astype(compute_dtype)
    h = jnp.dot(x, w0f_ref[...], preferred_element_type=jnp.float32)
    h = jnp.maximum(h, 0.0)                                   # (TN, nhidden) f32

    if nmid > 0:
        wdt = wmid_ref.dtype
        if nmid <= 4:
            # Short fixed depth: static unroll.
            for l in range(nmid):
                h = jnp.maximum(
                    jnp.dot(h.astype(wdt), wmid_ref[l],
                            preferred_element_type=jnp.float32), 0.0)
        else:
            # Deep stacks: fori_loop bounds live ranges; unroll keeps LLO visibility.
            def body(l, hh):
                return jnp.maximum(
                    jnp.dot(hh.astype(wdt), wmid_ref[l],
                            preferred_element_type=jnp.float32), 0.0)
            h = jax.lax.fori_loop(0, nmid, body, h, unroll=True)

    y = jnp.dot(h.astype(wlast_ref.dtype), wlast_ref[...],
                preferred_element_type=jnp.float32)
    o_ref[...] = y.astype(o_ref.dtype)


def sagnn_agp_forward(x, w_agp, w0, w_mid, w_last, *, tile_n=512, use_bf16=True):
    """Fused SaGnnAGP forward (eval mode, bias='none').

    x:      (N, nfeat, nagp) float32
    w_agp:  (nagp,)          float32   (weight of Linear(nagp, 1, bias=False))
    w0:     (nfeat, nhidden)
    w_mid:  (nmid, nhidden, nhidden)
    w_last: (nhidden, nclass)
    returns (N, nclass) float32
    """
    N, nfeat, nagp = x.shape
    nhidden = w0.shape[1]
    nclass = w_last.shape[1]
    nmid = int(w_mid.shape[0])
    K = nfeat * nagp

    # --- Fold AGP contraction + first-layer residual into the first matmul ---
    # y[n,j] = sum_{f,a} x[n,f,a]*wagp[a]*w0[f,j]  (+ sum_a x[n,j,a]*wagp[a] if residual)
    w0_fused = (w0[:, None, :] * w_agp[None, :, None]).reshape(K, nhidden)
    if nfeat == nhidden:
        w0_fused = w0_fused + (
            jnp.eye(nfeat, dtype=w0.dtype)[:, None, :] * w_agp[None, :, None]
        ).reshape(K, nhidden)

    # --- Fold residual identities into the weights (in f32, before bf16 cast) ---
    # relu(h @ W + h) == relu(h @ (W + I));  h @ Wl + h == h @ (Wl + I).
    if nmid > 0:
        w_mid_f = w_mid + jnp.eye(nhidden, dtype=w_mid.dtype)[None]
    else:
        w_mid_f = w_mid
    if nhidden == nclass:
        w_last_f = w_last + jnp.eye(nhidden, dtype=w_last.dtype)
    else:
        w_last_f = w_last

    # x stays f32 into the kernel (no standalone astype / pad passes over x).
    x2 = x.reshape(N, K)                      # lane-dense, no-copy reshape

    if use_bf16:
        compute_dtype = jnp.bfloat16
        w0_fused = w0_fused.astype(jnp.bfloat16)
        w_mid_f = w_mid_f.astype(jnp.bfloat16)
        w_last_f = w_last_f.astype(jnp.bfloat16)
    else:
        compute_dtype = jnp.float32

    wt_size = jnp.dtype(compute_dtype).itemsize
    x_size = x2.dtype.itemsize                # 4 (f32 into the kernel)

    # --- Node-axis tiling: ragged N handled by Pallas (no wrapper-side pad) ---
    tile_align = 16                           # bf16 packs 16 rows per sublane tile
    tile_n = min(max(tile_n, tile_align), _round_up(N, tile_align))
    if N >= 2 * tile_align:
        # Keep >= 2 grid steps so 'parallel' can split across v7x's 2 TensorCores.
        tile_n = min(tile_n, _round_up(pl.cdiv(N, 2), tile_align))
    tile_n = _round_up(tile_n, tile_align)

    # --- Generation-aware VMEM budget (single-buffered weights) ---
    w_bytes = (K * nhidden + nmid * nhidden * nhidden + nhidden * nclass) * wt_size
    try:
        vmem_cap = int(pltpu.get_tpu_info().vmem_capacity_bytes)
    except Exception:
        vmem_cap = 64 * 1024 * 1024           # conservative (v7x-sized) fallback

    def vmem_need(tn):
        x_buf = 2 * tn * K * x_size                           # double-buffered x tiles
        o_buf = 2 * tn * nclass * 4                           # double-buffered out tiles
        tmp = tn * (K * wt_size + 4 * nhidden + wt_size * nhidden
                    + 4 * max(nhidden, nclass))               # in-kernel temporaries
        return x_buf + o_buf + w_bytes + tmp + (2 << 20)

    budget = int(vmem_cap * 0.85)
    while vmem_need(tile_n) > budget and tile_n > tile_align:
        tile_n = max(tile_align, _round_up(tile_n // 2, tile_align))
    vmem_limit = int(min(budget, max(vmem_need(tile_n), 32 * 1024 * 1024)))

    grid_n = int(pl.cdiv(N, tile_n))

    # --- Cost estimate (ragged last block still does the full tile of math) ---
    n_eff = grid_n * tile_n
    flops = 2 * n_eff * (K * nhidden + nmid * nhidden * nhidden + nhidden * nclass)
    bytes_accessed = N * K * x_size + w_bytes + N * nclass * 4
    cost = pl.CostEstimate(flops=flops, transcendentals=0,
                           bytes_accessed=bytes_accessed)

    kernel = functools.partial(_sagnn_kernel, nmid=nmid, compute_dtype=compute_dtype)

    args = [x2, w0_fused]
    if nmid > 0:
        args.append(w_mid_f)
    args.append(w_last_f)

    def make_in_specs(single_buffer_weights):
        # Weights: constant index_map, fetched once -> single-buffer them (halves
        # the VMEM of the nagp-times-larger fused first-layer weight; matters on
        # v7x's 64 MiB VMEM).
        def wspec(shape):
            nd = len(shape)
            if single_buffer_weights:
                return pl.BlockSpec(shape, lambda i: (0,) * nd,
                                    pipeline_mode=pl.Buffered(1))
            return pl.BlockSpec(shape, lambda i: (0,) * nd)

        specs = [pl.BlockSpec((tile_n, K), lambda i: (i, 0)),
                 wspec((K, nhidden))]
        if nmid > 0:
            specs.append(wspec((nmid, nhidden, nhidden)))
        specs.append(wspec((nhidden, nclass)))
        return specs

    last_err = None
    for single_buf in (True, False):          # fall back if Buffered(1) unsupported
        try:
            out = pl.pallas_call(
                kernel,
                out_shape=jax.ShapeDtypeStruct((N, nclass), jnp.float32),
                grid=(grid_n,),
                in_specs=make_in_specs(single_buf),
                out_specs=pl.BlockSpec((tile_n, nclass), lambda i: (i, 0)),
                compiler_params=pltpu.CompilerParams(
                    dimension_semantics=("parallel",),
                    vmem_limit_bytes=vmem_limit),
                cost_estimate=cost,
            )(*args)
            return out
        except Exception as e:                # pragma: no cover
            last_err = e
    raise last_err


def sagnn_agp_reference(x, w_agp, w0, w_mid, w_last):
    """Pure-JAX reference matching the PyTorch forward (eval mode)."""
    nfeat, nhidden = w0.shape
    nclass = w_last.shape[1]
    h = jnp.einsum("nfa,a->nf", x, w_agp)
    y = h @ w0
    if nfeat == nhidden:
        y = y + h
    h = jax.nn.relu(y)
    for l in range(w_mid.shape[0]):
        h = jax.nn.relu(h @ w_mid[l] + h)
    y = h @ w_last
    if nhidden == nclass:
        y = y + h
    return y


if __name__ == "__main__":
    # Small, module-consistent shapes.
    N = 64          # number of nodes
    nagp = 8        # propagation hops (last dim of input)
    nfeat = 16
    nlayers = 4     # -> 2 middle residual Dense layers
    nhidden = 32
    nclass = 8
    nmid = nlayers - 2

    key = jax.random.PRNGKey(0)
    k_x, k_agp, k_w0, k_wmid, k_wlast = jax.random.split(key, 5)

    x = jax.random.normal(k_x, (N, nfeat, nagp), dtype=jnp.float32)

    # Deterministic param init mirroring the PyTorch module's init schemes.
    lin_bound = 1.0 / math.sqrt(nagp)
    w_agp = jax.random.uniform(k_agp, (nagp,), jnp.float32, -lin_bound, lin_bound)

    stdv0 = 1.0 / math.sqrt(nhidden)
    w0 = jax.random.uniform(k_w0, (nfeat, nhidden), jnp.float32, -stdv0, stdv0)
    w_mid = jax.random.uniform(k_wmid, (nmid, nhidden, nhidden), jnp.float32,
                               -stdv0, stdv0)

    stdvl = 1.0 / math.sqrt(nclass)
    w_last = jax.random.uniform(k_wlast, (nhidden, nclass), jnp.float32,
                                -stdvl, stdvl)

    ref = sagnn_agp_reference(x, w_agp, w0, w_mid, w_last)

    # f32 path: tight structural check (AGP/residual folds + ragged tiling).
    out_f32 = jax.block_until_ready(
        sagnn_agp_forward(x, w_agp, w0, w_mid, w_last, use_bf16=False))
    assert out_f32.shape == (N, nclass)
    assert jnp.allclose(out_f32, ref, atol=2e-3, rtol=2e-3), "f32 mismatch vs reference"

    # bf16 path (perf default): f32 accumulation, loose tolerance.
    out_bf16 = jax.block_until_ready(
        sagnn_agp_forward(x, w_agp, w0, w_mid, w_last, use_bf16=True))
    assert out_bf16.shape == (N, nclass)
    assert jnp.allclose(out_bf16, ref, atol=5e-2, rtol=5e-2), "bf16 mismatch vs reference"

    print("KERNEL_OK")
</pallas_src>

<mosaic_0001>
module attributes {stable_mosaic.version = 11 : i64} {
  func.func @_sagnn_kernel(%arg0: i32, %arg1: memref<32x128xf32, #tpu.memory_space<vmem>>, %arg2: memref<128x32xf32, #tpu.memory_space<vmem>>, %arg3: memref<2x32x32xf32, #tpu.memory_space<vmem>>, %arg4: memref<32x8xf32, #tpu.memory_space<vmem>>, %arg5: memref<32x8xf32, #tpu.memory_space<vmem>>) attributes {dimension_semantics = [#tpu.dimension_semantics<parallel>], iteration_bounds = array<i64: 2>, scalar_prefetch = 0 : i64, scratch_operands = 0 : i64, tpu.core_type = #tpu.core_type<tc>, window_params = [{transform_indices = @transform_0, window_bounds = array<i64: 32, 128>}, {pipeline_mode = #tpu.pipeline_mode<synchronous>, transform_indices = @transform_1, window_bounds = array<i64: 128, 32>}, {pipeline_mode = #tpu.pipeline_mode<synchronous>, transform_indices = @transform_2, window_bounds = array<i64: 2, 32, 32>}, {pipeline_mode = #tpu.pipeline_mode<synchronous>, transform_indices = @transform_3, window_bounds = array<i64: 32, 8>}, {transform_indices = @transform_4, window_bounds = array<i64: 32, 8>}]} {
    %c0 = arith.constant 0 : index
    %c0_0 = arith.constant 0 : index
    %0 = vector.load %arg1[%c0, %c0_0] : memref<32x128xf32, #tpu.memory_space<vmem>>, vector<32x128xf32>
    %c0_1 = arith.constant 0 : index
    %c0_2 = arith.constant 0 : index
    %1 = vector.load %arg2[%c0_1, %c0_2] : memref<128x32xf32, #tpu.memory_space<vmem>>, vector<128x32xf32>
    %cst = arith.constant dense<0.000000e+00> : vector<32x32xf32>
    %2 = tpu.matmul %0, %1, %cst {dimension_numbers = #tpu.dot_dimension_numbers<[1], [0], [0], [1], [0, 0, 1, 1], [], []>} : vector<32x128xf32>, vector<128x32xf32>, vector<32x32xf32> -> vector<32x32xf32>
    %cst_3 = arith.constant 0.000000e+00 : f32
    %3 = vector.broadcast %cst_3 : f32 to vector<32x32xf32>
    %4 = arith.maximumf %2, %3 : vector<32x32xf32>
    %c0_4 = arith.constant 0 : index
    %c0_5 = arith.constant 0 : index
    %c0_6 = arith.constant 0 : index
    %5 = vector.load %arg3[%c0_4, %c0_5, %c0_6] : memref<2x32x32xf32, #tpu.memory_space<vmem>>, vector<1x32x32xf32>
    %6 = vector.shape_cast %5 : vector<1x32x32xf32> to vector<32x32xf32>
    %cst_7 = arith.constant dense<0.000000e+00> : vector<32x32xf32>
    %7 = tpu.matmul %4, %6, %cst_7 {dimension_numbers = #tpu.dot_dimension_numbers<[1], [0], [0], [1], [0, 0, 1, 1], [], []>} : vector<32x32xf32>, vector<32x32xf32>, vector<32x32xf32> -> vector<32x32xf32>
    %cst_8 = arith.constant 0.000000e+00 : f32
    %8 = vector.broadcast %cst_8 : f32 to vector<32x32xf32>
    %9 = arith.maximumf %7, %8 : vector<32x32xf32>
    %c1 = arith.constant 1 : index
    %c0_9 = arith.constant 0 : index
    %c0_10 = arith.constant 0 : index
    %10 = vector.load %arg3[%c1, %c0_9, %c0_10] : memref<2x32x32xf32, #tpu.memory_space<vmem>>, vector<1x32x32xf32>
    %11 = vector.shape_cast %10 : vector<1x32x32xf32> to vector<32x32xf32>
    %cst_11 = arith.constant dense<0.000000e+00> : vector<32x32xf32>
    %12 = tpu.matmul %9, %11, %cst_11 {dimension_numbers = #tpu.dot_dimension_numbers<[1], [0], [0], [1], [0, 0, 1, 1], [], []>} : vector<32x32xf32>, vector<32x32xf32>, vector<32x32xf32> -> vector<32x32xf32>
    %cst_12 = arith.constant 0.000000e+00 : f32
    %13 = vector.broadcast %cst_12 : f32 to vector<32x32xf32>
    %14 = arith.maximumf %12, %13 : vector<32x32xf32>
    %c0_13 = arith.constant 0 : index
    %c0_14 = arith.constant 0 : index
    %15 = vector.load %arg4[%c0_13, %c0_14] : memref<32x8xf32, #tpu.memory_space<vmem>>, vector<32x8xf32>
    %cst_15 = arith.constant dense<0.000000e+00> : vector<32x8xf32>
    %16 = tpu.matmul %14, %15, %cst_15 {dimension_numbers = #tpu.dot_dimension_numbers<[1], [0], [0], [1], [0, 0, 1, 1], [], []>} : vector<32x32xf32>, vector<32x8xf32>, vector<32x8xf32> -> vector<32x8xf32>
    %c0_16 = arith.constant 0 : index
    %c0_17 = arith.constant 0 : index
    %17 = vector.load %arg5[%c0_16, %c0_17] : memref<32x8xf32, #tpu.memory_space<vmem>>, vector<32x8xf32>
    tpu.vector_store %arg5[%c0_16, %c0_17], %16 {strides = array<i32>} : memref<32x8xf32, #tpu.memory_space<vmem>>, vector<32x8xf32>,
    return
  }
  func.func @transform_0(%arg0: i32) -> (i32, i32) {
    %c0_i32 = arith.constant 0 : i32
    %c0_i32_0 = arith.constant 0 : i32
    return %arg0, %c0_i32 : i32, i32
  }
  func.func @transform_1(%arg0: i32) -> (i32, i32) {
    %c0_i32 = arith.constant 0 : i32
    %c0_i32_0 = arith.constant 0 : i32
    %c0_i32_1 = arith.constant 0 : i32
    return %c0_i32, %c0_i32_0 : i32, i32
  }
  func.func @transform_2(%arg0: i32) -> (i32, i32, i32) {
    %c0_i32 = arith.constant 0 : i32
    %c0_i32_0 = arith.constant 0 : i32
    %c0_i32_1 = arith.constant 0 : i32
    %c0_i32_2 = arith.constant 0 : i32
    return %c0_i32, %c0_i32_0, %c0_i32_1 : i32, i32, i32
  }
  func.func @transform_3(%arg0: i32) -> (i32, i32) {
    %c0_i32 = arith.constant 0 : i32
    %c0_i32_0 = arith.constant 0 : i32
    %c0_i32_1 = arith.constant 0 : i32
    return %c0_i32, %c0_i32_0 : i32, i32
  }
  func.func @transform_4(%arg0: i32) -> (i32, i32) {
    %c0_i32 = arith.constant 0 : i32
    %c0_i32_0 = arith.constant 0 : i32
    return %arg0, %c0_i32 : i32, i32
  }
}

module attributes {stable_mosaic.version = 11 : i64} {
  func.func @_sagnn_kernel(%arg0: i32, %arg1: memref<32x128xf32, #tpu.memory_space<vmem>>, %arg2: memref<128x32xf32, #tpu.memory_space<vmem>>, %arg3: memref<2x32x32xf32, #tpu.memory_space<vmem>>, %arg4: memref<32x8xf32, #tpu.memory_space<vmem>>, %arg5: memref<32x8xf32, #tpu.memory_space<vmem>>) attributes {dimension_semantics = [#tpu.dimension_semantics<parallel>], iteration_bounds = array<i64: 2>, scalar_prefetch = 0 : i64, scratch_operands = 0 : i64, tpu.core_type = #tpu.core_type<tc>, window_params = [{transform_indices = @transform_0, window_bounds = array<i64: 32, 128>}, {pipeline_mode = #tpu.pipeline_mode<synchronous>, transform_indices = @transform_1, window_bounds = array<i64: 128, 32>}, {pipeline_mode = #tpu.pipeline_mode<synchronous>, transform_indices = @transform_2, window_bounds = array<i64: 2, 32, 32>}, {pipeline_mode = #tpu.pipeline_mode<synchronous>, transform_indices = @transform_3, window_bounds = array<i64: 32, 8>}, {transform_indices = @transform_4, window_bounds = array<i64: 32, 8>}]} {
    %c0 = arith.constant 0 : index
    %c0_0 = arith.constant 0 : index
    %0 = vector.load %arg1[%c0, %c0_0] : memref<32x128xf32, #tpu.memory_space<vmem>>, vector<32x128xf32>
    %c0_1 = arith.constant 0 : index
    %c0_2 = arith.constant 0 : index
    %1 = vector.load %arg2[%c0_1, %c0_2] : memref<128x32xf32, #tpu.memory_space<vmem>>, vector<128x32xf32>
    %cst = arith.constant dense<0.000000e+00> : vector<32x32xf32>
    %2 = tpu.matmul %0, %1, %cst {dimension_numbers = #tpu.dot_dimension_numbers<[1], [0], [0], [1], [0, 0, 1, 1], [], []>} : vector<32x128xf32>, vector<128x32xf32>, vector<32x32xf32> -> vector<32x32xf32>
    %cst_3 = arith.constant 0.000000e+00 : f32
    %3 = vector.broadcast %cst_3 : f32 to vector<32x32xf32>
    %4 = arith.maximumf %2, %3 : vector<32x32xf32>
    %c0_4 = arith.constant 0 : index
    %c0_5 = arith.constant 0 : index
    %c0_6 = arith.constant 0 : index
    %5 = vector.load %arg3[%c0_4, %c0_5, %c0_6] : memref<2x32x32xf32, #tpu.memory_space<vmem>>, vector<1x32x32xf32>
    %6 = vector.shape_cast %5 : vector<1x32x32xf32> to vector<32x32xf32>
    %cst_7 = arith.constant dense<0.000000e+00> : vector<32x32xf32>
    %7 = tpu.matmul %4, %6, %cst_7 {dimension_numbers = #tpu.dot_dimension_numbers<[1], [0], [0], [1], [0, 0, 1, 1], [], []>} : vector<32x32xf32>, vector<32x32xf32>, vector<32x32xf32> -> vector<32x32xf32>
    %cst_8 = arith.constant 0.000000e+00 : f32
    %8 = vector.broadcast %cst_8 : f32 to vector<32x32xf32>
    %9 = arith.maximumf %7, %8 : vector<32x32xf32>
    %c1 = arith.constant 1 : index
    %c0_9 = arith.constant 0 : index
    %c0_10 = arith.constant 0 : index
    %10 = vector.load %arg3[%c1, %c0_9, %c0_10] : memref<2x32x32xf32, #tpu.memory_space<vmem>>, vector<1x32x32xf32>
    %11 = vector.shape_cast %10 : vector<1x32x32xf32> to vector<32x32xf32>
    %cst_11 = arith.constant dense<0.000000e+00> : vector<32x32xf32>
    %12 = tpu.matmul %9, %11, %cst_11 {dimension_numbers = #tpu.dot_dimension_numbers<[1], [0], [0], [1], [0, 0, 1, 1], [], []>} : vector<32x32xf32>, vector<32x32xf32>, vector<32x32xf32> -> vector<32x32xf32>
    %cst_12 = arith.constant 0.000000e+00 : f32
    %13 = vector.broadcast %cst_12 : f32 to vector<32x32xf32>
    %14 = arith.maximumf %12, %13 : vector<32x32xf32>
    %c0_13 = arith.constant 0 : index
    %c0_14 = arith.constant 0 : index
    %15 = vector.load %arg4[%c0_13, %c0_14] : memref<32x8xf32, #tpu.memory_space<vmem>>, vector<32x8xf32>
    %cst_15 = arith.constant dense<0.000000e+00> : vector<32x8xf32>
    %16 = tpu.matmul %14, %15, %cst_15 {dimension_numbers = #tpu.dot_dimension_numbers<[1], [0], [0], [1], [0, 0, 1, 1], [], []>} : vector<32x32xf32>, vector<32x8xf32>, vector<32x8xf32> -> vector<32x8xf32>
    %c0_16 = arith.constant 0 : index
    %c0_17 = arith.constant 0 : index
    %17 = vector.load %arg5[%c0_16, %c0_17] : memref<32x8xf32, #tpu.memory_space<vmem>>, vector<32x8xf32>
    tpu.vector_store %arg5[%c0_16, %c0_17], %16 {strides = array<i32>} : memref<32x8xf32, #tpu.memory_space<vmem>>, vector<32x8xf32>,
    return
  }
  func.func @transform_0(%arg0: i32) -> (i32, i32) {
    %c0_i32 = arith.constant 0 : i32
    %c0_i32_0 = arith.constant 0 : i32
    return %arg0, %c0_i32 : i32, i32
  }
  func.func @transform_1(%arg0: i32) -> (i32, i32) {
    %c0_i32 = arith.constant 0 : i32
    %c0_i32_0 = arith.constant 0 : i32
    %c0_i32_1 = arith.constant 0 : i32
    return %c0_i32, %c0_i32_0 : i32, i32
  }
  func.func @transform_2(%arg0: i32) -> (i32, i32, i32) {
    %c0_i32 = arith.constant 0 : i32
    %c0_i32_0 = arith.constant 0 : i32
    %c0_i32_1 = arith.constant 0 : i32
    %c0_i32_2 = arith.constant 0 : i32
    return %c0_i32, %c0_i32_0, %c0_i32_1 : i32, i32, i32
  }
  func.func @transform_3(%arg0: i32) -> (i32, i32) {
    %c0_i32 = arith.constant 0 : i32
    %c0_i32_0 = arith.constant 0 : i32
    %c0_i32_1 = arith.constant 0 : i32
    return %c0_i32, %c0_i32_0 : i32, i32
  }
  func.func @transform_4(%arg0: i32) -> (i32, i32) {
    %c0_i32 = arith.constant 0 : i32
    %c0_i32_0 = arith.constant 0 : i32
    return %arg0, %c0_i32 : i32, i32
  }
}

</mosaic_0001>

<bundles_post_ra>
// kernel: tpu_custom_call.1
= control target key start
LH: loop header
LB: loop body
LE: loop exit
PB: predicated region body
PF: predicated region fallthrough
CT: control target
= control target key end

     0   :  { %s932_s15 = smov 0   ;;  %s1058_s0 = inlined_call_operand.vmem [shape: f32[64,128], index: 0, kind: input, shape index: {}]   ;;  %s1059_s1 = inlined_call_operand.vmem [shape: f32[128,32], index: 1, kind: input, shape index: {}]   ;;  %s1060_s2 = inlined_call_operand.vmem [shape: f32[2,32,32], index: 2, kind: input, shape index: {}]   ;;  %s1061_s3 = inlined_call_operand.vmem [shape: f32[32,8], index: 3, kind: input, shape index: {}]   ;;  %s1062_s4 = inlined_call_operand.vmem [shape: f32[64,8], index: 4, kind: output, shape index: {}]  }
   0x1 LB: > { %s684_s16 = sadd.s32 4294967295, %s905_s15   ;;  %p688_p0 = scmp.ge.s32.totalorder %s905_s15, 1  ;;  %s905_s15 = sphi %s932_s15, %s14_s15  }
   0x2   : > { %p163_p1 = scmp.lt.s32.totalorder %s905_s15, 3 }
   0x4   : > { %p164_p2 = pnand %p688_p0, %p163_p1 }
   0x5   : > { %v205_v0 = vld [vmem:[%s1059_s1] sm:$0xff] (!%p164_p2)  ;;  %v206_v1 = vld [vmem:[%s1059_s1 + $0x8] sm:$0xff] (!%p164_p2)  ;;  %v207_v2 = vld [vmem:[%s1059_s1 + $0x10] sm:$0xff] (!%p164_p2)  ;;  %s689_s23 = sshll.u32 (!%p164_p2), %s684_s16, 2  ;;  %vm314_vm0 = vcmask (!%p164_p2), 261120   ;;  %vm623_vm1 = vcmask (!%p164_p2), 64512  }
   0x6   : > { %167 = sbr.rel (%p164_p2) target bundleno = 906 (0x38a), region = 36  ;;  %v835_v3 = vpack.c.bf16 (!%p164_p2), %v206_v1, %v205_v0  ;;  %v208_v4 = vld [vmem:[%s1059_s1 + $0x18] sm:$0xff] (!%p164_p2)  ;;  %p190_p3 = scmp.lt.s32.totalorder (!%p164_p2), %s689_s23, 7  ;;  %v209_v6 = vld [vmem:[%s1059_s1 + $0x20] sm:$0xff] (!%p164_p2)  ;;  %v210_v7 = vld [vmem:[%s1059_s1 + $0x28] sm:$0xff] (!%p164_p2) }
   0x7   : > { %v839_v5 = vpack.c.bf16 (!%p164_p2), %v208_v4, %v207_v2  ;;  %v843_v8 = vpack.c.bf16 (!%p164_p2), %v210_v7, %v209_v6  ;;  %v310_v9 = vld [vmem:[%s1060_s2] sm:$0xff] (!%p164_p2)  ;;  %v311_v10 = vld [vmem:[%s1060_s2 + $0x8] sm:$0xff] (!%p164_p2)  ;;  %v211_v11 = vld [vmem:[%s1059_s1 + $0x30] sm:$0xff] (!%p164_p2) }
   0x8   : > { %836 = vmatprep.subr.bf16.mxu0 (!%p164_p2), %v835_v3  ;;  %v212_v12 = vld [vmem:[%s1059_s1 + $0x38] sm:$0xff] (!%p164_p2)  ;;  %v867_v13 = vpack.c.bf16 (!%p164_p2), %v311_v10, %v310_v9  ;;  %v213_v16 = vld [vmem:[%s1059_s1 + $0x40] sm:$0xff] (!%p164_p2)  ;;  %v214_v17 = vld [vmem:[%s1059_s1 + $0x48] sm:$0xff] (!%p164_p2) }
   0x9   : > { %838 = vmatpush3.bf16.msra.mxu0 (!%p164_p2), %v835_v3  ;;  %v847_v15 = vpack.c.bf16 (!%p164_p2), %v212_v12, %v211_v11  ;;  %v851_v18 = vpack.c.bf16 (!%p164_p2), %v214_v17, %v213_v16  ;;  %v215_v19 = vld [vmem:[%s1059_s1 + $0x50] sm:$0xff] (!%p164_p2)  ;;  %v216_v20 = vld [vmem:[%s1059_s1 + $0x58] sm:$0xff] (!%p164_p2)  ;;  %v217_v22 = vld [vmem:[%s1059_s1 + $0x60] sm:$0xff] (!%p164_p2) }
   0xa   : > { %840 = vmatprep.subr.bf16.mxu0 (!%p164_p2), %v839_v5  ;;  %868 = vmatprep.subr.bf16.mxu1 (!%p164_p2), %v867_v13  ;;  %v855_v21 = vpack.c.bf16 (!%p164_p2), %v216_v20, %v215_v19  ;;  %v218_v23 = vld [vmem:[%s1059_s1 + $0x68] sm:$0xff] (!%p164_p2)  ;;  %v219_v25 = vld [vmem:[%s1059_s1 + $0x70] sm:$0xff] (!%p164_p2)  ;;  %v220_v26 = vld [vmem:[%s1059_s1 + $0x78] sm:$0xff] (!%p164_p2) }
   0xb   : > { %870 = vmatpush3.bf16.msra.mxu1 (!%p164_p2), %v867_v13  ;;  %v859_v24 = vpack.c.bf16 (!%p164_p2), %v218_v23, %v217_v22  ;;  %v863_v27 = vpack.c.bf16 (!%p164_p2), %v220_v26, %v219_v25  ;;  %v312_v31 = vld [vmem:[%s1060_s2 + $0x10] sm:$0xff] (!%p164_p2)  ;;  %v313_v32 = vld [vmem:[%s1060_s2 + $0x18] sm:$0xff] (!%p164_p2)  ;;  %v697_v34 = vld [vmem:[%s1060_s2 + $0x20] sm:$0xff] (!%p164_p2) }
   0xc   : > { %v871_v33 = vpack.c.bf16 (!%p164_p2), %v313_v32, %v312_v31  ;;  %v698_v35 = vld [vmem:[%s1060_s2 + $0x28] sm:$0xff] (!%p164_p2)  ;;  %v699_v45 = vld [vmem:[%s1060_s2 + $0x30] sm:$0xff] (!%p164_p2)  ;;  %v700_v46 = vld [vmem:[%s1060_s2 + $0x38] sm:$0xff] (!%p164_p2) }
   0xd   : > { %s1064_s23 = smov (!%p190_p3, %s689_s23), 7  ;;  %842 = vmatpush3.bf16.msra.mxu0 %v839_v5  ;;  %v875_v36 = vpack.c.bf16 %v698_v35, %v697_v34  ;;  %v879_v47 = vpack.c.bf16 %v700_v46, %v699_v45  ;;  %v522_v48 = vld [vmem:[%s1061_s3] sm:$0xff]  ;;  %v523_v49 = vld [vmem:[%s1061_s3 + $0x8] sm:$0xff]  ;;  %v524_v59 = vld [vmem:[%s1061_s3 + $0x10] sm:$0xff] }
   0xe   : > { %s690_s30 = sshll.u32 %s1064_s23, 3  ;;  %844 = vmatprep.subr.bf16.mxu0 %v843_v8  ;;  %872 = vmatprep.subr.bf16.mxu1 %v871_v33  ;;  %v883_v50 = vpack.c.bf16 %v523_v49, %v522_v48  ;;  %v525_v60 = vld [vmem:[%s1061_s3 + $0x18] sm:$0xff] }
   0xf   : > { %s978_s16 = scalar_lea.vmem %s1058_s0, %s690_s30  ;;  %874 = vmatpush3.bf16.msra.mxu1 %v871_v33  ;;  %v887_v61 = vpack.c.bf16 %v525_v60, %v524_v59  ;;  %s199_s8 = scalar_lea.vmem %s1062_s4, %s690_s30 }
  0x10   : > { %v201_v14 = vld [vmem:[%s978_s16] sm:$0xff]  ;;  %v202_v28 = vld [vmem:[%s978_s16 + $0x8] sm:$0xff]  ;;  %v203_v29 = vld [vmem:[%s978_s16 + $0x10] sm:$0xff]  ;;  %876 = vmatprep.subr.bf16.mxu1 %v875_v36 }
  0x11   : > { %787 = vmatprep.mubr.f32.mxu0 %v201_v14  ;;  %846 = vmatpush3.bf16.msra.mxu0 %v843_v8  ;;  %v204_v30 = vld [vmem:[%s978_s16 + $0x18] sm:$0xff] }
  0x12   : > { %848 = vmatprep.subr.bf16.mxu0 %v847_v15 }
  0x15   : > { %850 = vmatpush3.bf16.msra.mxu0 %v847_v15 }
  0x16   : > { %852 = vmatprep.subr.bf16.mxu0 %v851_v18 }
  0x19   : > { %854 = vmatpush3.bf16.msra.mxu0 %v851_v18 }
  0x1a   : > { %856 = vmatprep.subr.bf16.mxu0 %v855_v21 }
  0x1d   : > { %858 = vmatpush3.bf16.msra.mxu0 %v855_v21 }
  0x1e   : > { %860 = vmatprep.subr.bf16.mxu0 %v859_v24 }
  0x21   : > { %862 = vmatpush3.bf16.msra.mxu0 %v859_v24 }
  0x22   : > { %864 = vmatprep.subr.bf16.mxu0 %v863_v27 }
  0x25   : > { %866 = vmatpush3.bf16.msra.mxu0 %v863_v27 }
  0x28   : > { %788 = vmatmul.mubr.f32.vlgmr.msra.gmra.mrb[0].mxu0 %v202_v28 }
  0x29   : > { %790 = vmatprep.mubr.f32.mxu0 %v203_v29 }
  0x2c   : > { %791 = vmatmul.mubr.f32.gmra.mrb[2].mxu0 %v204_v30 }
  0xfb   : > { %v789_v37 = vpop.f32.mrb[0].mxu0 }
  0xfc   : > { %v287_v38 = vpop.f32.mrb[1].mxu0  ;;  %v307_v40 = vmax.f32 %v789_v37, 0.0 }
  0xfd   : > { %v306_v39 = vmax.f32 %v287_v38, 0.0 }
  0xff   : > { %v792_v41 = vpop.f32.mrb[2].mxu0  ;;  %801 = vmatprep.mubr.msk.f32.mxu1 %vm314_vm0, %v306_v39 }
 0x100   : > { %v297_v42 = vpop.f32.mrb[3].mxu0  ;;  %802 = vmatmul.mubr.msk.f32.vlgmr.msra.gmra.mrb[0].mxu1 %vm314_vm0, %v307_v40  ;;  %v309_v44 = vmax.f32 %v792_v41, 0.0 }
 0x101   : > { %v308_v43 = vmax.f32 %v297_v42, 0.0  ;;  %878 = vmatpush3.bf16.msra.mxu1 %v875_v36 }
 0x102   : > { %880 = vmatprep.subr.bf16.mxu1 %v879_v47 }
 0x103   : > { %804 = vmatprep.mubr.msk.f32.mxu1 %vm314_vm0, %v308_v43 }
 0x104   : > { %805 = vmatmul.mubr.msk.f32.gmra.mrb[2].mxu1 %vm314_vm0, %v309_v44 }
 0x105   : > { %882 = vmatpush3.bf16.msra.mxu1 %v879_v47 }
 0x106   : > { %884 = vmatprep.subr.bf16.mxu1 %v883_v50 }
 0x1d3   : > { %v803_v51 = vpop.f32.mrb[0].mxu1 }
 0x1d4   : > { %v393_v52 = vpop.f32.mrb[1].mxu1  ;;  %v413_v54 = vmax.f32 %v803_v51, 0.0 }
 0x1d5   : > { %v412_v53 = vmax.f32 %v393_v52, 0.0 }
 0x1d7   : > { %v806_v55 = vpop.f32.mrb[2].mxu1  ;;  %815 = vmatprep.mubr.msk.f32.mxu1 %vm314_vm0, %v412_v53 }
 0x1d8   : > { %v403_v56 = vpop.f32.mrb[3].mxu1  ;;  %816 = vmatmul.mubr.msk.f32.vlgmr.msra.gmra.mrb[4].mxu1 %vm314_vm0, %v413_v54  ;;  %v415_v58 = vmax.f32 %v806_v55, 0.0 }
 0x1d9   : > { %v414_v57 = vmax.f32 %v403_v56, 0.0  ;;  %886 = vmatpush3.bf16.msra.mxu1 %v883_v50 }
 0x1da   : > { %888 = vmatprep.subr.bf16.mxu1 %v887_v61 }
 0x1db   : > { %818 = vmatprep.mubr.msk.f32.mxu1 %vm314_vm0, %v414_v57 }
 0x1dc   : > { %819 = vmatmul.mubr.msk.f32.gmra.mrb[6].mxu1 %vm314_vm0, %v415_v58 }
 0x1dd   : > { %890 = vmatpush3.bf16.msra.mxu1 %v887_v61 }
 0x2ab   : > { %v817_v62 = vpop.f32.mrb[4].mxu1 }
 0x2ac   : > { %v499_v63 = vpop.f32.mrb[5].mxu1  ;;  %v519_v1 = vmax.f32 %v817_v62, 0.0 }
 0x2ad   : > { %v518_v0 = vmax.f32 %v499_v63, 0.0 }
 0x2af   : > { %v820_v2 = vpop.f32.mrb[6].mxu1  ;;  %829 = vmatprep.mubr.msk.f32.mxu1 %vm314_vm0, %v518_v0 }
 0x2b0   : > { %v509_v3 = vpop.f32.mrb[7].mxu1  ;;  %830 = vmatmul.mubr.msk.f32.vlgmr.msra.gmra.mrb[8].mxu1 %vm314_vm0, %v519_v1  ;;  %v521_v5 = vmax.f32 %v820_v2, 0.0 }
 0x2b1   : > { %v520_v4 = vmax.f32 %v509_v3, 0.0 }
 0x2b3   : > { %832 = vmatprep.mubr.msk.f32.mxu1 %vm314_vm0, %v520_v4 }
 0x2b4   : > { %833 = vmatmul.mubr.msk.f32.gmra.mrb[10].mxu1 %vm314_vm0, %v521_v5 }
 0x383   : > { %v831_v6 = vpop.f32.mrb[8].mxu1 }
 0x384   : > { %v604_v7 = vpop.f32.mrb[9].mxu1  ;;  %625 = vst.msk [vmem:[%s199_s8 + $0x8] sm:$0xff] %vm623_vm1, %v831_v6 }
 0x385   : > { %624 = vst.msk [vmem:[%s199_s8] sm:$0xff] %vm623_vm1, %v604_v7 }
 0x387   : > { %v834_v8 = vpop.f32.mrb[10].mxu1 }
 0x388   : > { %v614_v9 = vpop.f32.mrb[11].mxu1  ;;  %627 = vst.msk [vmem:[%s199_s8 + $0x18] sm:$0xff] %vm623_vm1, %v834_v8 }
 0x389   : > { %626 = vst.msk [vmem:[%s199_s8 + $0x10] sm:$0xff] %vm623_vm1, %v614_v9 }
 0x38a PF: > { %s14_s15 = sadd.s32 1, %s905_s15  }
 0x38b   : > { %p11_p4 = scmp.ge.s32.totalorder %s14_s15, 4  }
 0x38d   :  { %13 = sbr.rel (!%p11_p4) target bundleno = 1 (0x1), region = 67 }

// kernel: tpu_custom_call.1
= control target key start
LH: loop header
LB: loop body
LE: loop exit
PB: predicated region body
PF: predicated region fallthrough
CT: control target
= control target key end

     0   :  { %s932_s15 = smov 0   ;;  %s1058_s0 = inlined_call_operand.vmem [shape: f32[64,128], index: 0, kind: input, shape index: {}]   ;;  %s1059_s1 = inlined_call_operand.vmem [shape: f32[128,32], index: 1, kind: input, shape index: {}]   ;;  %s1060_s2 = inlined_call_operand.vmem [shape: f32[2,32,32], index: 2, kind: input, shape index: {}]   ;;  %s1061_s3 = inlined_call_operand.vmem [shape: f32[32,8], index: 3, kind: input, shape index: {}]   ;;  %s1062_s4 = inlined_call_operand.vmem [shape: f32[64,8], index: 4, kind: output, shape index: {}]  }
   0x1 LB: > { %s684_s16 = sadd.s32 4294967295, %s905_s15   ;;  %p688_p0 = scmp.ge.s32.totalorder %s905_s15, 1  ;;  %s905_s15 = sphi %s932_s15, %s14_s15  }
   0x2   : > { %p163_p1 = scmp.lt.s32.totalorder %s905_s15, 3 }
   0x4   : > { %p164_p2 = pnand %p688_p0, %p163_p1 }
   0x5   : > { %v205_v0 = vld [vmem:[%s1059_s1] sm:$0xff] (!%p164_p2)  ;;  %v206_v1 = vld [vmem:[%s1059_s1 + $0x8] sm:$0xff] (!%p164_p2)  ;;  %v207_v2 = vld [vmem:[%s1059_s1 + $0x10] sm:$0xff] (!%p164_p2)  ;;  %s689_s23 = sshll.u32 (!%p164_p2), %s684_s16, 2  ;;  %vm314_vm0 = vcmask (!%p164_p2), 261120   ;;  %vm623_vm1 = vcmask (!%p164_p2), 64512  }
   0x6   : > { %167 = sbr.rel (%p164_p2) target bundleno = 906 (0x38a), region = 36  ;;  %v835_v3 = vpack.c.bf16 (!%p164_p2), %v206_v1, %v205_v0  ;;  %v208_v4 = vld [vmem:[%s1059_s1 + $0x18] sm:$0xff] (!%p164_p2)  ;;  %p190_p3 = scmp.lt.s32.totalorder (!%p164_p2), %s689_s23, 7  ;;  %v209_v6 = vld [vmem:[%s1059_s1 + $0x20] sm:$0xff] (!%p164_p2)  ;;  %v210_v7 = vld [vmem:[%s1059_s1 + $0x28] sm:$0xff] (!%p164_p2) }
   0x7   : > { %v839_v5 = vpack.c.bf16 (!%p164_p2), %v208_v4, %v207_v2  ;;  %v843_v8 = vpack.c.bf16 (!%p164_p2), %v210_v7, %v209_v6  ;;  %v310_v9 = vld [vmem:[%s1060_s2] sm:$0xff] (!%p164_p2)  ;;  %v311_v10 = vld [vmem:[%s1060_s2 + $0x8] sm:$0xff] (!%p164_p2)  ;;  %v211_v11 = vld [vmem:[%s1059_s1 + $0x30] sm:$0xff] (!%p164_p2) }
   0x8   : > { %836 = vmatprep.subr.bf16.mxu0 (!%p164_p2), %v835_v3  ;;  %v212_v12 = vld [vmem:[%s1059_s1 + $0x38] sm:$0xff] (!%p164_p2)  ;;  %v867_v13 = vpack.c.bf16 (!%p164_p2), %v311_v10, %v310_v9  ;;  %v213_v16 = vld [vmem:[%s1059_s1 + $0x40] sm:$0xff] (!%p164_p2)  ;;  %v214_v17 = vld [vmem:[%s1059_s1 + $0x48] sm:$0xff] (!%p164_p2) }
   0x9   : > { %838 = vmatpush3.bf16.msra.mxu0 (!%p164_p2), %v835_v3  ;;  %v847_v15 = vpack.c.bf16 (!%p164_p2), %v212_v12, %v211_v11  ;;  %v851_v18 = vpack.c.bf16 (!%p164_p2), %v214_v17, %v213_v16  ;;  %v215_v19 = vld [vmem:[%s1059_s1 + $0x50] sm:$0xff] (!%p164_p2)  ;;  %v216_v20 = vld [vmem:[%s1059_s1 + $0x58] sm:$0xff] (!%p164_p2)  ;;  %v217_v22 = vld [vmem:[%s1059_s1 + $0x60] sm:$0xff] (!%p164_p2) }
   0xa   : > { %840 = vmatprep.subr.bf16.mxu0 (!%p164_p2), %v839_v5  ;;  %868 = vmatprep.subr.bf16.mxu1 (!%p164_p2), %v867_v13  ;;  %v855_v21 = vpack.c.bf16 (!%p164_p2), %v216_v20, %v215_v19  ;;  %v218_v23 = vld [vmem:[%s1059_s1 + $0x68] sm:$0xff] (!%p164_p2)  ;;  %v219_v25 = vld [vmem:[%s1059_s1 + $0x70] sm:$0xff] (!%p164_p2)  ;;  %v220_v26 = vld [vmem:[%s1059_s1 + $0x78] sm:$0xff] (!%p164_p2) }
   0xb   : > { %870 = vmatpush3.bf16.msra.mxu1 (!%p164_p2), %v867_v13  ;;  %v859_v24 = vpack.c.bf16 (!%p164_p2), %v218_v23, %v217_v22  ;;  %v863_v27 = vpack.c.bf16 (!%p164_p2), %v220_v26, %v219_v25  ;;  %v312_v31 = vld [vmem:[%s1060_s2 + $0x10] sm:$0xff] (!%p164_p2)  ;;  %v313_v32 = vld [vmem:[%s1060_s2 + $0x18] sm:$0xff] (!%p164_p2)  ;;  %v697_v34 = vld [vmem:[%s1060_s2 + $0x20] sm:$0xff] (!%p164_p2) }
   0xc   : > { %v871_v33 = vpack.c.bf16 (!%p164_p2), %v313_v32, %v312_v31  ;;  %v698_v35 = vld [vmem:[%s1060_s2 + $0x28] sm:$0xff] (!%p164_p2)  ;;  %v699_v45 = vld [vmem:[%s1060_s2 + $0x30] sm:$0xff] (!%p164_p2)  ;;  %v700_v46 = vld [vmem:[%s1060_s2 + $0x38] sm:$0xff] (!%p164_p2) }
   0xd   : > { %s1064_s23 = smov (!%p190_p3, %s689_s23), 7  ;;  %842 = vmatpush3.bf16.msra.mxu0 %v839_v5  ;;  %v875_v36 = vpack.c.bf16 %v698_v35, %v697_v34  ;;  %v879_v47 = vpack.c.bf16 %v700_v46, %v699_v45  ;;  %v522_v48 = vld [vmem:[%s1061_s3] sm:$0xff]  ;;  %v523_v49 = vld [vmem:[%s1061_s3 + $0x8] sm:$0xff]  ;;  %v524_v59 = vld [vmem:[%s1061_s3 + $0x10] sm:$0xff] }
   0xe   : > { %s690_s30 = sshll.u32 %s1064_s23, 3  ;;  %844 = vmatprep.subr.bf16.mxu0 %v843_v8  ;;  %872 = vmatprep.subr.bf16.mxu1 %v871_v33  ;;  %v883_v50 = vpack.c.bf16 %v523_v49, %v522_v48  ;;  %v525_v60 = vld [vmem:[%s1061_s3 + $0x18] sm:$0xff] }
   0xf   : > { %s978_s16 = scalar_lea.vmem %s1058_s0, %s690_s30  ;;  %874 = vmatpush3.bf16.msra.mxu1 %v871_v33  ;;  %v887_v61 = vpack.c.bf16 %v525_v60, %v524_v59  ;;  %s199_s8 = scalar_lea.vmem %s1062_s4, %s690_s30 }
  0x10   : > { %v201_v14 = vld [vmem:[%s978_s16] sm:$0xff]  ;;  %v202_v28 = vld [vmem:[%s978_s16 + $0x8] sm:$0xff]  ;;  %v203_v29 = vld [vmem:[%s978_s16 + $0x10] sm:$0xff]  ;;  %876 = vmatprep.subr.bf16.mxu1 %v875_v36 }
  0x11   : > { %787 = vmatprep.mubr.f32.mxu0 %v201_v14  ;;  %846 = vmatpush3.bf16.msra.mxu0 %v843_v8  ;;  %v204_v30 = vld [vmem:[%s978_s16 + $0x18] sm:$0xff] }
  0x12   : > { %848 = vmatprep.subr.bf16.mxu0 %v847_v15 }
  0x15   : > { %850 = vmatpush3.bf16.msra.mxu0 %v847_v15 }
  0x16   : > { %852 = vmatprep.subr.bf16.mxu0 %v851_v18 }
  0x19   : > { %854 = vmatpush3.bf16.msra.mxu0 %v851_v18 }
  0x1a   : > { %856 = vmatprep.subr.bf16.mxu0 %v855_v21 }
  0x1d   : > { %858 = vmatpush3.bf16.msra.mxu0 %v855_v21 }
  0x1e   : > { %860 = vmatprep.subr.bf16.mxu0 %v859_v24 }
  0x21   : > { %862 = vmatpush3.bf16.msra.mxu0 %v859_v24 }
  0x22   : > { %864 = vmatprep.subr.bf16.mxu0 %v863_v27 }
  0x25   : > { %866 = vmatpush3.bf16.msra.mxu0 %v863_v27 }
  0x28   : > { %788 = vmatmul.mubr.f32.vlgmr.msra.gmra.mrb[0].mxu0 %v202_v28 }
  0x29   : > { %790 = vmatprep.mubr.f32.mxu0 %v203_v29 }
  0x2c   : > { %791 = vmatmul.mubr.f32.gmra.mrb[2].mxu0 %v204_v30 }
  0xfb   : > { %v789_v37 = vpop.f32.mrb[0].mxu0 }
  0xfc   : > { %v287_v38 = vpop.f32.mrb[1].mxu0  ;;  %v307_v40 = vmax.f32 %v789_v37, 0.0 }
  0xfd   : > { %v306_v39 = vmax.f32 %v287_v38, 0.0 }
  0xff   : > { %v792_v41 = vpop.f32.mrb[2].mxu0  ;;  %801 = vmatprep.mubr.msk.f32.mxu1 %vm314_vm0, %v306_v39 }
 0x100   : > { %v297_v42 = vpop.f32.mrb[3].mxu0  ;;  %802 = vmatmul.mubr.msk.f32.vlgmr.msra.gmra.mrb[0].mxu1 %vm314_vm0, %v307_v40  ;;  %v309_v44 = vmax.f32 %v792_v41, 0.0 }
 0x101   : > { %v308_v43 = vmax.f32 %v297_v42, 0.0  ;;  %878 = vmatpush3.bf16.msra.mxu1 %v875_v36 }
 0x102   : > { %880 = vmatprep.subr.bf16.mxu1 %v879_v47 }
 0x103   : > { %804 = vmatprep.mubr.msk.f32.mxu1 %vm314_vm0, %v308_v43 }
 0x104   : > { %805 = vmatmul.mubr.msk.f32.gmra.mrb[2].mxu1 %vm314_vm0, %v309_v44 }
 0x105   : > { %882 = vmatpush3.bf16.msra.mxu1 %v879_v47 }
 0x106   : > { %884 = vmatprep.subr.bf16.mxu1 %v883_v50 }
 0x1d3   : > { %v803_v51 = vpop.f32.mrb[0].mxu1 }
 0x1d4   : > { %v393_v52 = vpop.f32.mrb[1].mxu1  ;;  %v413_v54 = vmax.f32 %v803_v51, 0.0 }
 0x1d5   : > { %v412_v53 = vmax.f32 %v393_v52, 0.0 }
 0x1d7   : > { %v806_v55 = vpop.f32.mrb[2].mxu1  ;;  %815 = vmatprep.mubr.msk.f32.mxu1 %vm314_vm0, %v412_v53 }
 0x1d8   : > { %v403_v56 = vpop.f32.mrb[3].mxu1  ;;  %816 = vmatmul.mubr.msk.f32.vlgmr.msra.gmra.mrb[4].mxu1 %vm314_vm0, %v413_v54  ;;  %v415_v58 = vmax.f32 %v806_v55, 0.0 }
 0x1d9   : > { %v414_v57 = vmax.f32 %v403_v56, 0.0  ;;  %886 = vmatpush3.bf16.msra.mxu1 %v883_v50 }
 0x1da   : > { %888 = vmatprep.subr.bf16.mxu1 %v887_v61 }
 0x1db   : > { %818 = vmatprep.mubr.msk.f32.mxu1 %vm314_vm0, %v414_v57 }
 0x1dc   : > { %819 = vmatmul.mubr.msk.f32.gmra.mrb[6].mxu1 %vm314_vm0, %v415_v58 }
 0x1dd   : > { %890 = vmatpush3.bf16.msra.mxu1 %v887_v61 }
 0x2ab   : > { %v817_v62 = vpop.f32.mrb[4].mxu1 }
 0x2ac   : > { %v499_v63 = vpop.f32.mrb[5].mxu1  ;;  %v519_v1 = vmax.f32 %v817_v62, 0.0 }
 0x2ad   : > { %v518_v0 = vmax.f32 %v499_v63, 0.0 }
 0x2af   : > { %v820_v2 = vpop.f32.mrb[6].mxu1  ;;  %829 = vmatprep.mubr.msk.f32.mxu1 %vm314_vm0, %v518_v0 }
 0x2b0   : > { %v509_v3 = vpop.f32.mrb[7].mxu1  ;;  %830 = vmatmul.mubr.msk.f32.vlgmr.msra.gmra.mrb[8].mxu1 %vm314_vm0, %v519_v1  ;;  %v521_v5 = vmax.f32 %v820_v2, 0.0 }
 0x2b1   : > { %v520_v4 = vmax.f32 %v509_v3, 0.0 }
 0x2b3   : > { %832 = vmatprep.mubr.msk.f32.mxu1 %vm314_vm0, %v520_v4 }
 0x2b4   : > { %833 = vmatmul.mubr.msk.f32.gmra.mrb[10].mxu1 %vm314_vm0, %v521_v5 }
 0x383   : > { %v831_v6 = vpop.f32.mrb[8].mxu1 }
 0x384   : > { %v604_v7 = vpop.f32.mrb[9].mxu1  ;;  %625 = vst.msk [vmem:[%s199_s8 + $0x8] sm:$0xff] %vm623_vm1, %v831_v6 }
 0x385   : > { %624 = vst.msk [vmem:[%s199_s8] sm:$0xff] %vm623_vm1, %v604_v7 }
 0x387   : > { %v834_v8 = vpop.f32.mrb[10].mxu1 }
 0x388   : > { %v614_v9 = vpop.f32.mrb[11].mxu1  ;;  %627 = vst.msk [vmem:[%s199_s8 + $0x18] sm:$0xff] %vm623_vm1, %v834_v8 }
 0x389   : > { %626 = vst.msk [vmem:[%s199_s8 + $0x10] sm:$0xff] %vm623_vm1, %v614_v9 }
 0x38a PF: > { %s14_s15 = sadd.s32 1, %s905_s15  }
 0x38b   : > { %p11_p4 = scmp.ge.s32.totalorder %s14_s15, 4  }
 0x38d   :  { %13 = sbr.rel (!%p11_p4) target bundleno = 1 (0x1), region = 67 }

</bundles_post_ra>
